<compile_context>
chip_gen: v6e
topology: v6e:2x2x1
jax: 0.10.0
libtpu: 0.0.40
codegen_flags: <defaults>
</compile_context>

<pallas_src>
import functools
import math

import jax
import jax.numpy as jnp
from jax.experimental import pallas as pl
from jax.experimental.pallas import tpu as pltpu

# ----------------------------- config ---------------------------------------
VOCAB = 100
MAX_POS = 64
HIDDEN = 64
HEADS = 4
HEAD_DIM = HIDDEN // HEADS
LAYERS = 2
FFN = 128
EPS = 1e-5
PAD_TOKEN = 1       # RoBERTa padding_idx for position embeddings
OUT_LANES = 128     # lane-dense output slab (HIDDEN padded up to 128)


# ----------------------------- fused encoder kernel -------------------------
def _encoder_kernel(bias_ref, xemb_ref, eg_ref, eb_ref,
                    wqkv_ref, bqkv_ref, wo_ref, bo_ref,
                    w1_ref, b1_ref, w2_ref, b2_ref,
                    ln1g_ref, ln1b_ref, ln2g_ref, ln2b_ref,
                    out_ref, x_scratch, *, seq):
    """One (batch-block, layer) grid step of the RoBERTa encoder.

    grid = (B, LAYERS):  axis 0 "parallel" over batch, axis 1 "arbitrary" over
    layers (per-layer weights streamed; activations persist in x_scratch).

    bias_ref : (1, 1, S)   f32  additive attention bias (precomputed in XLA)
    xemb_ref : (1, S, H)   bf16 word+pos+type embedding sum for this batch
    weights  : per-layer blocks, matrices bf16, vectors f32
    out_ref  : (1, S, 128) f32  lane-dense output slab (first H lanes valid)
    x_scratch: (S, H)      f32  VMEM-resident activations across the layer axis
    """
    l = pl.program_id(1)
    H, D, NH = HIDDEN, HEAD_DIM, HEADS

    def layernorm(x, g, b):
        mu = jnp.mean(x, axis=-1, keepdims=True)
        var = jnp.mean(jnp.square(x - mu), axis=-1, keepdims=True)
        return (x - mu) * jax.lax.rsqrt(var + EPS) * g + b

    def gelu(x):
        # tanh-approx GELU (EUP-friendly on all generations).
        # TODO(synk): HF RoBERTa uses exact erf GELU; ~1e-3 drift per layer.
        return 0.5 * x * (1.0 + jnp.tanh(0.7978845608028654 *
                                         (x + 0.044715 * x * x * x)))

    # ---- embedding LayerNorm once per batch block (layer 0 only) ----
    @pl.when(l == 0)
    def _():
        x_scratch[...] = layernorm(xemb_ref[0].astype(jnp.float32),
                                   eg_ref[...], eb_ref[...])

    x = x_scratch[...]                       # (S, H) f32
    bias = bias_ref[0]                       # (1, S) additive mask bias

    # ---- fused QKV projection: one MXU pass, N = 3H.  Attention scale is
    #      pre-folded into the Q weights offline. ----
    qkv = jnp.dot(x.astype(jnp.bfloat16), wqkv_ref[0],
                  preferred_element_type=jnp.float32) + bqkv_ref[0]   # (S, 3H)

    # ---- head-major packing: the single cross-lane relayout point.
    #      Everything downstream is head-batched (no per-head matmuls). ----
    def heads(base):
        parts = [qkv[:, base + h * D: base + (h + 1) * D] for h in range(NH)]
        return jnp.stack(parts, axis=0).astype(jnp.bfloat16)          # (NH,S,D)

    qh, kh, vh = heads(0), heads(H), heads(2 * H)

    # ---- batched attention over all heads at once ----
    s = jnp.einsum('hqd,hkd->hqk', qh, kh,
                   preferred_element_type=jnp.float32)                # (NH,S,S)
    s = s + bias[None]                                                # mask
    s = s - jnp.max(s, axis=-1, keepdims=True)
    p = jnp.exp(s)
    p = p * pl.reciprocal(jnp.sum(p, axis=-1, keepdims=True), approx=True)
    ctx = jnp.einsum('hqk,hkd->hqd', p.astype(jnp.bfloat16), vh,
                     preferred_element_type=jnp.float32)              # (NH,S,D)

    # merge heads back to token-major lanes, then ONE output projection (K=H)
    ctx_full = jnp.concatenate([ctx[h] for h in range(NH)], axis=-1)  # (S, H)
    attn = jnp.dot(ctx_full.astype(jnp.bfloat16), wo_ref[0],
                   preferred_element_type=jnp.float32) + bo_ref[0]
    x = layernorm(attn + x, ln1g_ref[0], ln1b_ref[0])

    # ---- fused FFN: w1 + GELU + w2, intermediate stays in vregs/VMEM ----
    h1 = jnp.dot(x.astype(jnp.bfloat16), w1_ref[0],
                 preferred_element_type=jnp.float32) + b1_ref[0]
    h1 = gelu(h1)
    h2 = jnp.dot(h1.astype(jnp.bfloat16), w2_ref[0],
                 preferred_element_type=jnp.float32) + b2_ref[0]
    x = layernorm(h2 + x, ln2g_ref[0], ln2b_ref[0])

    x_scratch[...] = x

    # ---- lane-dense write-out on the last layer only ----
    @pl.when(l == pl.num_programs(1) - 1)
    def _():
        out_ref[0] = jnp.concatenate(
            [x, jnp.zeros((seq, OUT_LANES - HIDDEN), jnp.float32)], axis=-1)


def run_encoder(params, x_emb, bias, batch, seq):
    """Fused encoder: grid = (batch 'parallel', layers 'arbitrary')."""
    kernel = functools.partial(_encoder_kernel, seq=seq)

    bmap = lambda b, l: (b, 0, 0)      # batch-blocked, layer-invariant
    lmap = lambda b, l: (l, 0, 0)      # per-layer weight streaming
    cmap = lambda b, l: (0, 0)         # shared small vectors

    out = pl.pallas_call(
        kernel,
        out_shape=jax.ShapeDtypeStruct((batch, seq, OUT_LANES), jnp.float32),
        grid=(batch, LAYERS),
        in_specs=[
            pl.BlockSpec((1, 1, seq), bmap),                 # bias
            pl.BlockSpec((1, seq, HIDDEN), bmap),            # x_emb (bf16)
            pl.BlockSpec((1, HIDDEN), cmap),                 # emb_ln_g
            pl.BlockSpec((1, HIDDEN), cmap),                 # emb_ln_b
            pl.BlockSpec((1, HIDDEN, 3 * HIDDEN), lmap),     # wqkv
            pl.BlockSpec((1, 1, 3 * HIDDEN), lmap),          # bqkv
            pl.BlockSpec((1, HIDDEN, HIDDEN), lmap),         # wo
            pl.BlockSpec((1, 1, HIDDEN), lmap),              # bo
            pl.BlockSpec((1, HIDDEN, FFN), lmap),            # w1
            pl.BlockSpec((1, 1, FFN), lmap),                 # b1
            pl.BlockSpec((1, FFN, HIDDEN), lmap),            # w2
            pl.BlockSpec((1, 1, HIDDEN), lmap),              # b2
            pl.BlockSpec((1, 1, HIDDEN), lmap),              # ln1_g
            pl.BlockSpec((1, 1, HIDDEN), lmap),              # ln1_b
            pl.BlockSpec((1, 1, HIDDEN), lmap),              # ln2_g
            pl.BlockSpec((1, 1, HIDDEN), lmap),              # ln2_b
        ],
        out_specs=pl.BlockSpec((1, seq, OUT_LANES), bmap),
        scratch_shapes=[pltpu.VMEM((seq, HIDDEN), jnp.float32)],
        compiler_params=pltpu.CompilerParams(
            dimension_semantics=("parallel", "arbitrary"),
            vmem_limit_bytes=32 * 1024 * 1024),
    )(bias, x_emb,
      params["emb_ln_g"], params["emb_ln_b"],
      params["wqkv"], params["bqkv"], params["wo"], params["bo"],
      params["w1"], params["b1"], params["w2"], params["b2"],
      params["ln1_g"], params["ln1_b"], params["ln2_g"], params["ln2_b"])
    return out[:, :, :HIDDEN]            # strip lane padding -> (B, S, H)


# ----------------------------- parameters -----------------------------------
def init_params(key):
    def nrm(k, shape, scale=0.02):
        return scale * jax.random.normal(k, shape, dtype=jnp.float32)

    keys = iter(jax.random.split(key, 4 + LAYERS * 6))
    params = {
        "word_emb": nrm(next(keys), (VOCAB, HIDDEN)),
        "pos_emb": nrm(next(keys), (MAX_POS, HIDDEN)),
        "type_emb": nrm(next(keys), (2, HIDDEN)),
        "emb_ln_g": jnp.ones((1, HIDDEN), jnp.float32),
        "emb_ln_b": jnp.zeros((1, HIDDEN), jnp.float32),
        "l0_w": nrm(next(keys), (HIDDEN, 2)),   # nn.Linear(768, 2) analogue
        "l0_b": jnp.zeros((2,), jnp.float32),
    }
    attn_scale = 1.0 / math.sqrt(HEAD_DIM)
    wqkv, wo, w1, w2 = [], [], [], []
    for _ in range(LAYERS):
        # attention scale folded into the Q weights (bias is zero) — removes the
        # per-layer score-tensor multiply from the kernel.
        wq = nrm(next(keys), (HIDDEN, HIDDEN)) * attn_scale
        wk = nrm(next(keys), (HIDDEN, HIDDEN))
        wv = nrm(next(keys), (HIDDEN, HIDDEN))
        wqkv.append(jnp.concatenate([wq, wk, wv], axis=1))   # (H, 3H)
        wo.append(nrm(next(keys), (HIDDEN, HIDDEN)))
        w1.append(nrm(next(keys), (HIDDEN, FFN)))
        w2.append(nrm(next(keys), (FFN, HIDDEN)))

    # matmul weights stored bf16 (MXU-native on v6e/v7x); vectors stay f32
    params["wqkv"] = jnp.stack(wqkv).astype(jnp.bfloat16)            # (L,H,3H)
    params["bqkv"] = jnp.zeros((LAYERS, 1, 3 * HIDDEN), jnp.float32)
    params["wo"] = jnp.stack(wo).astype(jnp.bfloat16)                # (L,H,H)
    params["bo"] = jnp.zeros((LAYERS, 1, HIDDEN), jnp.float32)
    params["w1"] = jnp.stack(w1).astype(jnp.bfloat16)                # (L,H,F)
    params["b1"] = jnp.zeros((LAYERS, 1, FFN), jnp.float32)
    params["w2"] = jnp.stack(w2).astype(jnp.bfloat16)                # (L,F,H)
    params["b2"] = jnp.zeros((LAYERS, 1, HIDDEN), jnp.float32)
    params["ln1_g"] = jnp.ones((LAYERS, 1, HIDDEN), jnp.float32)
    params["ln1_b"] = jnp.zeros((LAYERS, 1, HIDDEN), jnp.float32)
    params["ln2_g"] = jnp.ones((LAYERS, 1, HIDDEN), jnp.float32)
    params["ln2_b"] = jnp.zeros((LAYERS, 1, HIDDEN), jnp.float32)
    return params


# ----------------------------- forward ---------------------------------------
def tweet_model_forward(params, ids, mask, token_type_ids):
    del token_type_ids  # TweetModel.forward never passes token_type_ids to bert
    B, S = ids.shape

    # --- embeddings (gathers are plain-JAX glue) ---
    word = jnp.take(params["word_emb"], ids, axis=0)
    pos_ids = (jnp.cumsum(mask, axis=1) * mask).astype(jnp.int32) + PAD_TOKEN
    pos_ids = jnp.minimum(pos_ids, MAX_POS - 1)       # clamp (safety)
    pos = jnp.take(params["pos_emb"], pos_ids, axis=0)
    typ = jnp.take(params["type_emb"], jnp.zeros_like(ids), axis=0)
    # bf16 at the kernel boundary (halves input DMA); LN stats run in f32 inside
    x_emb = (word + pos + typ).astype(jnp.bfloat16)                  # (B, S, H)

    # additive attention bias precomputed once (hoisted out of the kernel)
    bias = ((1.0 - mask.astype(jnp.float32)) * -1e9).reshape(B, 1, S)

    # --- fused encoder (one pallas_call, batch-parallel x layer-streamed) ---
    seq_out = run_encoder(params, x_emb, bias, B, S)                 # (B, S, H)

    # pooled_output of RobertaModel is unused by TweetModel.forward -> skipped.

    # --- span head: tiny N=2 matmul kept in plain XLA ---
    logits = jnp.einsum('bsh,ho->bso', seq_out, params["l0_w"]) + params["l0_b"]
    start_logits = logits[..., 0]   # == logits.split(1, dim=-1)[0].squeeze(-1)
    end_logits = logits[..., 1]     # == logits.split(1, dim=-1)[1].squeeze(-1)
    return start_logits, end_logits


# ----------------------------- main ------------------------------------------
if __name__ == "__main__":
    key = jax.random.PRNGKey(0)
    pkey, ikey = jax.random.split(key)
    params = init_params(pkey)

    B, S = 2, 8
    ids = jax.random.randint(ikey, (B, S), 2, VOCAB, dtype=jnp.int32)
    mask = jnp.ones((B, S), dtype=jnp.int32).at[1, -2:].set(0)   # some padding
    token_type_ids = jnp.zeros((B, S), dtype=jnp.int32)

    fwd = jax.jit(tweet_model_forward)
    start_logits, end_logits = fwd(params, ids, mask, token_type_ids)
    jax.block_until_ready((start_logits, end_logits))

    assert start_logits.shape == (B, S) and end_logits.shape == (B, S)
    assert bool(jnp.all(jnp.isfinite(start_logits)))
    assert bool(jnp.all(jnp.isfinite(end_logits)))
    print("KERNEL_OK")
</pallas_src>

<mosaic_0001>
module attributes {stable_mosaic.version = 11 : i64} {
  func.func @_encoder_kernel(%arg0: i32, %arg1: i32, %arg2: memref<1x1x8xf32, #tpu.memory_space<vmem>>, %arg3: memref<1x8x64xbf16, #tpu.memory_space<vmem>>, %arg4: memref<1x64xf32, #tpu.memory_space<vmem>>, %arg5: memref<1x64xf32, #tpu.memory_space<vmem>>, %arg6: memref<1x64x192xbf16, #tpu.memory_space<vmem>>, %arg7: memref<1x1x192xf32, #tpu.memory_space<vmem>>, %arg8: memref<1x64x64xbf16, #tpu.memory_space<vmem>>, %arg9: memref<1x1x64xf32, #tpu.memory_space<vmem>>, %arg10: memref<1x64x128xbf16, #tpu.memory_space<vmem>>, %arg11: memref<1x1x128xf32, #tpu.memory_space<vmem>>, %arg12: memref<1x128x64xbf16, #tpu.memory_space<vmem>>, %arg13: memref<1x1x64xf32, #tpu.memory_space<vmem>>, %arg14: memref<1x1x64xf32, #tpu.memory_space<vmem>>, %arg15: memref<1x1x64xf32, #tpu.memory_space<vmem>>, %arg16: memref<1x1x64xf32, #tpu.memory_space<vmem>>, %arg17: memref<1x1x64xf32, #tpu.memory_space<vmem>>, %arg18: memref<1x8x128xf32, #tpu.memory_space<vmem>>, %arg19: memref<8x64xf32, #tpu.memory_space<vmem>>) attributes {dimension_semantics = [#tpu.dimension_semantics<parallel>, #tpu.dimension_semantics<arbitrary>], iteration_bounds = array<i64: 2, 2>, scalar_prefetch = 0 : i64, scratch_operands = 1 : i64, tpu.core_type = #tpu.core_type<tc>, window_params = [{transform_indices = @transform_0, window_bounds = array<i64: 1, 1, 8>}, {transform_indices = @transform_1, window_bounds = array<i64: 1, 8, 64>}, {pipeline_mode = #tpu.pipeline_mode<synchronous>, transform_indices = @transform_2, window_bounds = array<i64: 1, 64>}, {pipeline_mode = #tpu.pipeline_mode<synchronous>, transform_indices = @transform_3, window_bounds = array<i64: 1, 64>}, {transform_indices = @transform_4, window_bounds = array<i64: 1, 64, 192>}, {transform_indices = @transform_5, window_bounds = array<i64: 1, 1, 192>}, {transform_indices = @transform_6, window_bounds = array<i64: 1, 64, 64>}, {transform_indices = @transform_7, window_bounds = array<i64: 1, 1, 64>}, {transform_indices = @transform_8, window_bounds = array<i64: 1, 64, 128>}, {transform_indices = @transform_9, window_bounds = array<i64: 1, 1, 128>}, {transform_indices = @transform_10, window_bounds = array<i64: 1, 128, 64>}, {transform_indices = @transform_11, window_bounds = array<i64: 1, 1, 64>}, {transform_indices = @transform_12, window_bounds = array<i64: 1, 1, 64>}, {transform_indices = @transform_13, window_bounds = array<i64: 1, 1, 64>}, {transform_indices = @transform_14, window_bounds = array<i64: 1, 1, 64>}, {transform_indices = @transform_15, window_bounds = array<i64: 1, 1, 64>}, {transform_indices = @transform_16, window_bounds = array<i64: 1, 8, 128>}]} {
    %c0_i32 = arith.constant 0 : i32
    %0 = arith.cmpi eq, %arg1, %c0_i32 : i32
    %1 = arith.extui %0 : i1 to i32
    %c0_i32_0 = arith.constant 0 : i32
    %2 = arith.cmpi ne, %1, %c0_i32_0 : i32
    scf.if %2 {
      %c0_65 = arith.constant 0 : index
      %c0_66 = arith.constant 0 : index
      %c0_67 = arith.constant 0 : index
      %164 = vector.load %arg3[%c0_65, %c0_66, %c0_67] : memref<1x8x64xbf16, #tpu.memory_space<vmem>>, vector<1x8x64xbf16>
      %165 = vector.shape_cast %164 : vector<1x8x64xbf16> to vector<8x64xbf16>
      %166 = arith.extf %165 : vector<8x64xbf16> to vector<8x64xf32>
      %c0_68 = arith.constant 0 : index
      %c0_69 = arith.constant 0 : index
      %167 = vector.load %arg4[%c0_68, %c0_69] : memref<1x64xf32, #tpu.memory_space<vmem>>, vector<1x64xf32>
      %c0_70 = arith.constant 0 : index
      %c0_71 = arith.constant 0 : index
      %168 = vector.load %arg5[%c0_70, %c0_71] : memref<1x64xf32, #tpu.memory_space<vmem>>, vector<1x64xf32>
      %cst_72 = arith.constant dense<0.000000e+00> : vector<8xf32>
      %169 = vector.multi_reduction <add>, %166, %cst_72 [1] : vector<8x64xf32> to vector<8xf32>
      %170 = vector.shape_cast %169 : vector<8xf32> to vector<8x1xf32>
      %cst_73 = arith.constant 6.400000e+01 : f32
      %171 = vector.broadcast %cst_73 : f32 to vector<8x1xf32>
      %172 = arith.divf %170, %171 : vector<8x1xf32>
      %173 = vector.broadcast %172 : vector<8x1xf32> to vector<8x64xf32>
      %174 = arith.subf %166, %173 : vector<8x64xf32>
      %175 = arith.mulf %174, %174 : vector<8x64xf32>
      %cst_74 = arith.constant dense<0.000000e+00> : vector<8xf32>
      %176 = vector.multi_reduction <add>, %175, %cst_74 [1] : vector<8x64xf32> to vector<8xf32>
      %177 = vector.shape_cast %176 : vector<8xf32> to vector<8x1xf32>
      %cst_75 = arith.constant 6.400000e+01 : f32
      %178 = vector.broadcast %cst_75 : f32 to vector<8x1xf32>
      %179 = arith.divf %177, %178 : vector<8x1xf32>
      %180 = vector.broadcast %172 : vector<8x1xf32> to vector<8x64xf32>
      %181 = arith.subf %166, %180 : vector<8x64xf32>
      %cst_76 = arith.constant 9.99999974E-6 : f32
      %182 = vector.broadcast %cst_76 : f32 to vector<8x1xf32>
      %183 = arith.addf %179, %182 : vector<8x1xf32>
      %184 = math.rsqrt %183 : vector<8x1xf32>
      %185 = vector.broadcast %184 : vector<8x1xf32> to vector<8x64xf32>
      %186 = arith.mulf %181, %185 : vector<8x64xf32>
      %187 = vector.broadcast %167 : vector<1x64xf32> to vector<8x64xf32>
      %188 = arith.mulf %186, %187 : vector<8x64xf32>
      %189 = vector.broadcast %168 : vector<1x64xf32> to vector<8x64xf32>
      %190 = arith.addf %188, %189 : vector<8x64xf32>
      %c0_77 = arith.constant 0 : index
      %c0_78 = arith.constant 0 : index
      %191 = vector.load %arg19[%c0_77, %c0_78] : memref<8x64xf32, #tpu.memory_space<vmem>>, vector<8x64xf32>
      tpu.vector_store %arg19[%c0_77, %c0_78], %190 {strides = array<i32>} : memref<8x64xf32, #tpu.memory_space<vmem>>, vector<8x64xf32>,
    } else {
    }
    %c0 = arith.constant 0 : index
    %c0_1 = arith.constant 0 : index
    %3 = vector.load %arg19[%c0, %c0_1] : memref<8x64xf32, #tpu.memory_space<vmem>>, vector<8x64xf32>
    %c0_2 = arith.constant 0 : index
    %c0_3 = arith.constant 0 : index
    %c0_4 = arith.constant 0 : index
    %4 = vector.load %arg2[%c0_2, %c0_3, %c0_4] : memref<1x1x8xf32, #tpu.memory_space<vmem>>, vector<1x1x8xf32>
    %5 = vector.shape_cast %4 : vector<1x1x8xf32> to vector<1x8xf32>
    %6 = arith.truncf %3 : vector<8x64xf32> to vector<8x64xbf16>
    %c0_5 = arith.constant 0 : index
    %c0_6 = arith.constant 0 : index
    %c0_7 = arith.constant 0 : index
    %7 = vector.load %arg6[%c0_5, %c0_6, %c0_7] : memref<1x64x192xbf16, #tpu.memory_space<vmem>>, vector<1x64x192xbf16>
    %8 = vector.shape_cast %7 : vector<1x64x192xbf16> to vector<64x192xbf16>
    %cst = arith.constant dense<0.000000e+00> : vector<8x192xf32>
    %9 = tpu.matmul %6, %8, %cst {dimension_numbers = #tpu.dot_dimension_numbers<[1], [0], [0], [1], [0, 0, 1, 1], [], []>} : vector<8x64xbf16>, vector<64x192xbf16>, vector<8x192xf32> -> vector<8x192xf32>
    %c0_8 = arith.constant 0 : index
    %c0_9 = arith.constant 0 : index
    %c0_10 = arith.constant 0 : index
    %10 = vector.load %arg7[%c0_8, %c0_9, %c0_10] : memref<1x1x192xf32, #tpu.memory_space<vmem>>, vector<1x1x192xf32>
    %11 = vector.shape_cast %10 : vector<1x1x192xf32> to vector<1x192xf32>
    %12 = vector.broadcast %11 : vector<1x192xf32> to vector<8x192xf32>
    %13 = arith.addf %9, %12 : vector<8x192xf32>
    %14 = vector.extract_strided_slice %13 {offsets = [0, 0], sizes = [8, 16], strides = [1, 1]} : vector<8x192xf32> to vector<8x16xf32>
    %15 = vector.extract_strided_slice %13 {offsets = [0, 16], sizes = [8, 16], strides = [1, 1]} : vector<8x192xf32> to vector<8x16xf32>
    %16 = vector.extract_strided_slice %13 {offsets = [0, 32], sizes = [8, 16], strides = [1, 1]} : vector<8x192xf32> to vector<8x16xf32>
    %17 = vector.extract_strided_slice %13 {offsets = [0, 48], sizes = [8, 16], strides = [1, 1]} : vector<8x192xf32> to vector<8x16xf32>
    %18 = vector.shape_cast %14 : vector<8x16xf32> to vector<1x8x16xf32>
    %19 = vector.shape_cast %15 : vector<8x16xf32> to vector<1x8x16xf32>
    %20 = vector.shape_cast %16 : vector<8x16xf32> to vector<1x8x16xf32>
    %21 = vector.shape_cast %17 : vector<8x16xf32> to vector<1x8x16xf32>
    %22 = tpu.concatenate %18, %19, %20, %21 in 0 : vector<1x8x16xf32>, vector<1x8x16xf32>, vector<1x8x16xf32>, vector<1x8x16xf32> -> vector<4x8x16xf32>
    %23 = arith.truncf %22 : vector<4x8x16xf32> to vector<4x8x16xbf16>
    %24 = vector.extract_strided_slice %13 {offsets = [0, 64], sizes = [8, 16], strides = [1, 1]} : vector<8x192xf32> to vector<8x16xf32>
    %25 = vector.extract_strided_slice %13 {offsets = [0, 80], sizes = [8, 16], strides = [1, 1]} : vector<8x192xf32> to vector<8x16xf32>
    %26 = vector.extract_strided_slice %13 {offsets = [0, 96], sizes = [8, 16], strides = [1, 1]} : vector<8x192xf32> to vector<8x16xf32>
    %27 = vector.extract_strided_slice %13 {offsets = [0, 112], sizes = [8, 16], strides = [1, 1]} : vector<8x192xf32> to vector<8x16xf32>
    %28 = vector.shape_cast %24 : vector<8x16xf32> to vector<1x8x16xf32>
    %29 = vector.shape_cast %25 : vector<8x16xf32> to vector<1x8x16xf32>
    %30 = vector.shape_cast %26 : vector<8x16xf32> to vector<1x8x16xf32>
    %31 = vector.shape_cast %27 : vector<8x16xf32> to vector<1x8x16xf32>
    %32 = tpu.concatenate %28, %29, %30, %31 in 0 : vector<1x8x16xf32>, vector<1x8x16xf32>, vector<1x8x16xf32>, vector<1x8x16xf32> -> vector<4x8x16xf32>
    %33 = arith.truncf %32 : vector<4x8x16xf32> to vector<4x8x16xbf16>
    %34 = vector.extract_strided_slice %13 {offsets = [0, 128], sizes = [8, 16], strides = [1, 1]} : vector<8x192xf32> to vector<8x16xf32>
    %35 = vector.extract_strided_slice %13 {offsets = [0, 144], sizes = [8, 16], strides = [1, 1]} : vector<8x192xf32> to vector<8x16xf32>
    %36 = vector.extract_strided_slice %13 {offsets = [0, 160], sizes = [8, 16], strides = [1, 1]} : vector<8x192xf32> to vector<8x16xf32>
    %37 = vector.extract_strided_slice %13 {offsets = [0, 176], sizes = [8, 16], strides = [1, 1]} : vector<8x192xf32> to vector<8x16xf32>
    %38 = vector.shape_cast %34 : vector<8x16xf32> to vector<1x8x16xf32>
    %39 = vector.shape_cast %35 : vector<8x16xf32> to vector<1x8x16xf32>
    %40 = vector.shape_cast %36 : vector<8x16xf32> to vector<1x8x16xf32>
    %41 = vector.shape_cast %37 : vector<8x16xf32> to vector<1x8x16xf32>
    %42 = tpu.concatenate %38, %39, %40, %41 in 0 : vector<1x8x16xf32>, vector<1x8x16xf32>, vector<1x8x16xf32>, vector<1x8x16xf32> -> vector<4x8x16xf32>
    %43 = arith.truncf %42 : vector<4x8x16xf32> to vector<4x8x16xbf16>
    "tpu.trace_start"() <{level = 10 : i32, message = "hqd,hkd->hqk"}> : () -> ()
    %cst_11 = arith.constant dense<0.000000e+00> : vector<4x8x8xf32>
    %44 = tpu.matmul %23, %33, %cst_11 {dimension_numbers = #tpu.dot_dimension_numbers<[2], [2], [1], [1], [0, 0, 0, 1, 1, 1], [0], [0]>} : vector<4x8x16xbf16>, vector<4x8x16xbf16>, vector<4x8x8xf32> -> vector<4x8x8xf32>
    "tpu.trace_stop"() : () -> ()
    %45 = vector.shape_cast %5 : vector<1x8xf32> to vector<1x1x8xf32>
    %46 = vector.broadcast %45 : vector<1x1x8xf32> to vector<4x8x8xf32>
    %47 = arith.addf %44, %46 : vector<4x8x8xf32>
    %cst_12 = arith.constant dense<0xFF800000> : vector<4x8xf32>
    %48 = vector.multi_reduction <maximumf>, %47, %cst_12 [2] : vector<4x8x8xf32> to vector<4x8xf32>
    %49 = vector.shape_cast %48 : vector<4x8xf32> to vector<4x8x1xf32>
    %50 = vector.broadcast %49 : vector<4x8x1xf32> to vector<4x8x8xf32>
    %51 = arith.subf %47, %50 : vector<4x8x8xf32>
    %52 = math.exp %51 : vector<4x8x8xf32>
    %cst_13 = arith.constant dense<0.000000e+00> : vector<4x8xf32>
    %53 = vector.multi_reduction <add>, %52, %cst_13 [2] : vector<4x8x8xf32> to vector<4x8xf32>
    %54 = vector.shape_cast %53 : vector<4x8xf32> to vector<4x8x1xf32>
    %55 = tpu.reciprocal %54 {approx = true} : vector<4x8x1xf32> -> vector<4x8x1xf32>
    %56 = vector.broadcast %55 : vector<4x8x1xf32> to vector<4x8x8xf32>
    %57 = arith.mulf %52, %56 : vector<4x8x8xf32>
    %58 = arith.truncf %57 : vector<4x8x8xf32> to vector<4x8x8xbf16>
    "tpu.trace_start"() <{level = 10 : i32, message = "hqk,hkd->hqd"}> : () -> ()
    %cst_14 = arith.constant dense<0.000000e+00> : vector<4x8x16xf32>
    %59 = tpu.matmul %58, %43, %cst_14 {dimension_numbers = #tpu.dot_dimension_numbers<[2], [1], [1], [2], [0, 0, 0, 1, 1, 2], [0], [0]>} : vector<4x8x8xbf16>, vector<4x8x16xbf16>, vector<4x8x16xf32> -> vector<4x8x16xf32>
    "tpu.trace_stop"() : () -> ()
    %60 = vector.extract_strided_slice %59 {offsets = [0, 0, 0], sizes = [1, 8, 16], strides = [1, 1, 1]} : vector<4x8x16xf32> to vector<1x8x16xf32>
    %61 = vector.shape_cast %60 : vector<1x8x16xf32> to vector<8x16xf32>
    %62 = vector.extract_strided_slice %59 {offsets = [1, 0, 0], sizes = [1, 8, 16], strides = [1, 1, 1]} : vector<4x8x16xf32> to vector<1x8x16xf32>
    %63 = vector.shape_cast %62 : vector<1x8x16xf32> to vector<8x16xf32>
    %64 = vector.extract_strided_slice %59 {offsets = [2, 0, 0], sizes = [1, 8, 16], strides = [1, 1, 1]} : vector<4x8x16xf32> to vector<1x8x16xf32>
    %65 = vector.shape_cast %64 : vector<1x8x16xf32> to vector<8x16xf32>
    %66 = vector.extract_strided_slice %59 {offsets = [3, 0, 0], sizes = [1, 8, 16], strides = [1, 1, 1]} : vector<4x8x16xf32> to vector<1x8x16xf32>
    %67 = vector.shape_cast %66 : vector<1x8x16xf32> to vector<8x16xf32>
    %68 = tpu.concatenate %61, %63, %65, %67 in 1 : vector<8x16xf32>, vector<8x16xf32>, vector<8x16xf32>, vector<8x16xf32> -> vector<8x64xf32>
    %69 = arith.truncf %68 : vector<8x64xf32> to vector<8x64xbf16>
    %c0_15 = arith.constant 0 : index
    %c0_16 = arith.constant 0 : index
    %c0_17 = arith.constant 0 : index
    %70 = vector.load %arg8[%c0_15, %c0_16, %c0_17] : memref<1x64x64xbf16, #tpu.memory_space<vmem>>, vector<1x64x64xbf16>
    %71 = vector.shape_cast %70 : vector<1x64x64xbf16> to vector<64x64xbf16>
    %cst_18 = arith.constant dense<0.000000e+00> : vector<8x64xf32>
    %72 = tpu.matmul %69, %71, %cst_18 {dimension_numbers = #tpu.dot_dimension_numbers<[1], [0], [0], [1], [0, 0, 1, 1], [], []>} : vector<8x64xbf16>, vector<64x64xbf16>, vector<8x64xf32> -> vector<8x64xf32>
    %c0_19 = arith.constant 0 : index
    %c0_20 = arith.constant 0 : index
    %c0_21 = arith.constant 0 : index
    %73 = vector.load %arg9[%c0_19, %c0_20, %c0_21] : memref<1x1x64xf32, #tpu.memory_space<vmem>>, vector<1x1x64xf32>
    %74 = vector.shape_cast %73 : vector<1x1x64xf32> to vector<1x64xf32>
    %75 = vector.broadcast %74 : vector<1x64xf32> to vector<8x64xf32>
    %76 = arith.addf %72, %75 : vector<8x64xf32>
    %77 = arith.addf %76, %3 : vector<8x64xf32>
    %c0_22 = arith.constant 0 : index
    %c0_23 = arith.constant 0 : index
    %c0_24 = arith.constant 0 : index
    %78 = vector.load %arg14[%c0_22, %c0_23, %c0_24] : memref<1x1x64xf32, #tpu.memory_space<vmem>>, vector<1x1x64xf32>
    %79 = vector.shape_cast %78 : vector<1x1x64xf32> to vector<1x64xf32>
    %c0_25 = arith.constant 0 : index
    %c0_26 = arith.constant 0 : index
    %c0_27 = arith.constant 0 : index
    %80 = vector.load %arg15[%c0_25, %c0_26, %c0_27] : memref<1x1x64xf32, #tpu.memory_space<vmem>>, vector<1x1x64xf32>
    %81 = vector.shape_cast %80 : vector<1x1x64xf32> to vector<1x64xf32>
    %cst_28 = arith.constant dense<0.000000e+00> : vector<8xf32>
    %82 = vector.multi_reduction <add>, %77, %cst_28 [1] : vector<8x64xf32> to vector<8xf32>
    %83 = vector.shape_cast %82 : vector<8xf32> to vector<8x1xf32>
    %cst_29 = arith.constant 6.400000e+01 : f32
    %84 = vector.broadcast %cst_29 : f32 to vector<8x1xf32>
    %85 = arith.divf %83, %84 : vector<8x1xf32>
    %86 = vector.broadcast %85 : vector<8x1xf32> to vector<8x64xf32>
    %87 = arith.subf %77, %86 : vector<8x64xf32>
    %88 = arith.mulf %87, %87 : vector<8x64xf32>
    %cst_30 = arith.constant dense<0.000000e+00> : vector<8xf32>
    %89 = vector.multi_reduction <add>, %88, %cst_30 [1] : vector<8x64xf32> to vector<8xf32>
    %90 = vector.shape_cast %89 : vector<8xf32> to vector<8x1xf32>
    %cst_31 = arith.constant 6.400000e+01 : f32
    %91 = vector.broadcast %cst_31 : f32 to vector<8x1xf32>
    %92 = arith.divf %90, %91 : vector<8x1xf32>
    %93 = vector.broadcast %85 : vector<8x1xf32> to vector<8x64xf32>
    %94 = arith.subf %77, %93 : vector<8x64xf32>
    %cst_32 = arith.constant 9.99999974E-6 : f32
    %95 = vector.broadcast %cst_32 : f32 to vector<8x1xf32>
    %96 = arith.addf %92, %95 : vector<8x1xf32>
    %97 = math.rsqrt %96 : vector<8x1xf32>
    %98 = vector.broadcast %97 : vector<8x1xf32> to vector<8x64xf32>
    %99 = arith.mulf %94, %98 : vector<8x64xf32>
    %100 = vector.broadcast %79 : vector<1x64xf32> to vector<8x64xf32>
    %101 = arith.mulf %99, %100 : vector<8x64xf32>
    %102 = vector.broadcast %81 : vector<1x64xf32> to vector<8x64xf32>
    %103 = arith.addf %101, %102 : vector<8x64xf32>
    %104 = arith.truncf %103 : vector<8x64xf32> to vector<8x64xbf16>
    %c0_33 = arith.constant 0 : index
    %c0_34 = arith.constant 0 : index
    %c0_35 = arith.constant 0 : index
    %105 = vector.load %arg10[%c0_33, %c0_34, %c0_35] : memref<1x64x128xbf16, #tpu.memory_space<vmem>>, vector<1x64x128xbf16>
    %106 = vector.shape_cast %105 : vector<1x64x128xbf16> to vector<64x128xbf16>
    %cst_36 = arith.constant dense<0.000000e+00> : vector<8x128xf32>
    %107 = tpu.matmul %104, %106, %cst_36 {dimension_numbers = #tpu.dot_dimension_numbers<[1], [0], [0], [1], [0, 0, 1, 1], [], []>} : vector<8x64xbf16>, vector<64x128xbf16>, vector<8x128xf32> -> vector<8x128xf32>
    %c0_37 = arith.constant 0 : index
    %c0_38 = arith.constant 0 : index
    %c0_39 = arith.constant 0 : index
    %108 = vector.load %arg11[%c0_37, %c0_38, %c0_39] : memref<1x1x128xf32, #tpu.memory_space<vmem>>, vector<1x1x128xf32>
    %109 = vector.shape_cast %108 : vector<1x1x128xf32> to vector<1x128xf32>
    %110 = vector.broadcast %109 : vector<1x128xf32> to vector<8x128xf32>
    %111 = arith.addf %107, %110 : vector<8x128xf32>
    %cst_40 = arith.constant 5.000000e-01 : f32
    %112 = vector.broadcast %cst_40 : f32 to vector<8x128xf32>
    %113 = arith.mulf %112, %111 : vector<8x128xf32>
    %cst_41 = arith.constant 4.471500e-02 : f32
    %114 = vector.broadcast %cst_41 : f32 to vector<8x128xf32>
    %115 = arith.mulf %114, %111 : vector<8x128xf32>
    %116 = arith.mulf %115, %111 : vector<8x128xf32>
    %117 = arith.mulf %116, %111 : vector<8x128xf32>
    %118 = arith.addf %111, %117 : vector<8x128xf32>
    %cst_42 = arith.constant 0.797884583 : f32
    %119 = vector.broadcast %cst_42 : f32 to vector<8x128xf32>
    %120 = arith.mulf %119, %118 : vector<8x128xf32>
    %121 = math.tanh %120 : vector<8x128xf32>
    %cst_43 = arith.constant 1.000000e+00 : f32
    %122 = vector.broadcast %cst_43 : f32 to vector<8x128xf32>
    %123 = arith.addf %122, %121 : vector<8x128xf32>
    %124 = arith.mulf %113, %123 : vector<8x128xf32>
    %125 = arith.truncf %124 : vector<8x128xf32> to vector<8x128xbf16>
    %c0_44 = arith.constant 0 : index
    %c0_45 = arith.constant 0 : index
    %c0_46 = arith.constant 0 : index
    %126 = vector.load %arg12[%c0_44, %c0_45, %c0_46] : memref<1x128x64xbf16, #tpu.memory_space<vmem>>, vector<1x128x64xbf16>
    %127 = vector.shape_cast %126 : vector<1x128x64xbf16> to vector<128x64xbf16>
    %cst_47 = arith.constant dense<0.000000e+00> : vector<8x64xf32>
    %128 = tpu.matmul %125, %127, %cst_47 {dimension_numbers = #tpu.dot_dimension_numbers<[1], [0], [0], [1], [0, 0, 1, 1], [], []>} : vector<8x128xbf16>, vector<128x64xbf16>, vector<8x64xf32> -> vector<8x64xf32>
    %c0_48 = arith.constant 0 : index
    %c0_49 = arith.constant 0 : index
    %c0_50 = arith.constant 0 : index
    %129 = vector.load %arg13[%c0_48, %c0_49, %c0_50] : memref<1x1x64xf32, #tpu.memory_space<vmem>>, vector<1x1x64xf32>
    %130 = vector.shape_cast %129 : vector<1x1x64xf32> to vector<1x64xf32>
    %131 = vector.broadcast %130 : vector<1x64xf32> to vector<8x64xf32>
    %132 = arith.addf %128, %131 : vector<8x64xf32>
    %133 = arith.addf %132, %103 : vector<8x64xf32>
    %c0_51 = arith.constant 0 : index
    %c0_52 = arith.constant 0 : index
    %c0_53 = arith.constant 0 : index
    %134 = vector.load %arg16[%c0_51, %c0_52, %c0_53] : memref<1x1x64xf32, #tpu.memory_space<vmem>>, vector<1x1x64xf32>
    %135 = vector.shape_cast %134 : vector<1x1x64xf32> to vector<1x64xf32>
    %c0_54 = arith.constant 0 : index
    %c0_55 = arith.constant 0 : index
    %c0_56 = arith.constant 0 : index
    %136 = vector.load %arg17[%c0_54, %c0_55, %c0_56] : memref<1x1x64xf32, #tpu.memory_space<vmem>>, vector<1x1x64xf32>
    %137 = vector.shape_cast %136 : vector<1x1x64xf32> to vector<1x64xf32>
    %cst_57 = arith.constant dense<0.000000e+00> : vector<8xf32>
    %138 = vector.multi_reduction <add>, %133, %cst_57 [1] : vector<8x64xf32> to vector<8xf32>
    %139 = vector.shape_cast %138 : vector<8xf32> to vector<8x1xf32>
    %cst_58 = arith.constant 6.400000e+01 : f32
    %140 = vector.broadcast %cst_58 : f32 to vector<8x1xf32>
    %141 = arith.divf %139, %140 : vector<8x1xf32>
    %142 = vector.broadcast %141 : vector<8x1xf32> to vector<8x64xf32>
    %143 = arith.subf %133, %142 : vector<8x64xf32>
    %144 = arith.mulf %143, %143 : vector<8x64xf32>
    %cst_59 = arith.constant dense<0.000000e+00> : vector<8xf32>
    %145 = vector.multi_reduction <add>, %144, %cst_59 [1] : vector<8x64xf32> to vector<8xf32>
    %146 = vector.shape_cast %145 : vector<8xf32> to vector<8x1xf32>
    %cst_60 = arith.constant 6.400000e+01 : f32
    %147 = vector.broadcast %cst_60 : f32 to vector<8x1xf32>
    %148 = arith.divf %146, %147 : vector<8x1xf32>
    %149 = vector.broadcast %141 : vector<8x1xf32> to vector<8x64xf32>
    %150 = arith.subf %133, %149 : vector<8x64xf32>
    %cst_61 = arith.constant 9.99999974E-6 : f32
    %151 = vector.broadcast %cst_61 : f32 to vector<8x1xf32>
    %152 = arith.addf %148, %151 : vector<8x1xf32>
    %153 = math.rsqrt %152 : vector<8x1xf32>
    %154 = vector.broadcast %153 : vector<8x1xf32> to vector<8x64xf32>
    %155 = arith.mulf %150, %154 : vector<8x64xf32>
    %156 = vector.broadcast %135 : vector<1x64xf32> to vector<8x64xf32>
    %157 = arith.mulf %155, %156 : vector<8x64xf32>
    %158 = vector.broadcast %137 : vector<1x64xf32> to vector<8x64xf32>
    %159 = arith.addf %157, %158 : vector<8x64xf32>
    %c0_62 = arith.constant 0 : index
    %c0_63 = arith.constant 0 : index
    %160 = vector.load %arg19[%c0_62, %c0_63] : memref<8x64xf32, #tpu.memory_space<vmem>>, vector<8x64xf32>
    tpu.vector_store %arg19[%c0_62, %c0_63], %159 {strides = array<i32>} : memref<8x64xf32, #tpu.memory_space<vmem>>, vector<8x64xf32>,
    %c1_i32 = arith.constant 1 : i32
    %161 = arith.cmpi eq, %arg1, %c1_i32 : i32
    %162 = arith.extui %161 : i1 to i32
    %c0_i32_64 = arith.constant 0 : i32
    %163 = arith.cmpi ne, %162, %c0_i32_64 : i32
    scf.if %163 {
      %cst_65 = arith.constant 0.000000e+00 : f32
      %164 = vector.broadcast %cst_65 : f32 to vector<8x64xf32>
      %165 = tpu.concatenate %159, %164 in 1 : vector<8x64xf32>, vector<8x64xf32> -> vector<8x128xf32>
      %c0_66 = arith.constant 0 : index
      %c0_67 = arith.constant 0 : index
      %c0_68 = arith.constant 0 : index
      %166 = vector.load %arg18[%c0_66, %c0_67, %c0_68] : memref<1x8x128xf32, #tpu.memory_space<vmem>>, vector<1x8x128xf32>
      %167 = vector.shape_cast %166 : vector<1x8x128xf32> to vector<8x128xf32>
      %168 = vector.shape_cast %165 : vector<8x128xf32> to vector<1x8x128xf32>
      tpu.vector_store %arg18[%c0_66, %c0_67, %c0_68], %168 {strides = array<i32>} : memref<1x8x128xf32, #tpu.memory_space<vmem>>, vector<1x8x128xf32>,
    } else {
    }
    return
  }
  func.func @transform_0(%arg0: i32, %arg1: i32) -> (i32, i32, i32) {
    %c0_i32 = arith.constant 0 : i32
    %c0_i32_0 = arith.constant 0 : i32
    %c0_i32_1 = arith.constant 0 : i32
    return %arg0, %c0_i32, %c0_i32_0 : i32, i32, i32
  }
  func.func @transform_1(%arg0: i32, %arg1: i32) -> (i32, i32, i32) {
    %c0_i32 = arith.constant 0 : i32
    %c0_i32_0 = arith.constant 0 : i32
    %c0_i32_1 = arith.constant 0 : i32
    return %arg0, %c0_i32, %c0_i32_0 : i32, i32, i32
  }
  func.func @transform_2(%arg0: i32, %arg1: i32) -> (i32, i32) {
    %c0_i32 = arith.constant 0 : i32
    %c0_i32_0 = arith.constant 0 : i32
    %c0_i32_1 = arith.constant 0 : i32
    return %c0_i32, %c0_i32_0 : i32, i32
  }
  func.func @transform_3(%arg0: i32, %arg1: i32) -> (i32, i32) {
    %c0_i32 = arith.constant 0 : i32
    %c0_i32_0 = arith.constant 0 : i32
    %c0_i32_1 = arith.constant 0 : i32
    return %c0_i32, %c0_i32_0 : i32, i32
  }
  func.func @transform_4(%arg0: i32, %arg1: i32) -> (i32, i32, i32) {
    %c0_i32 = arith.constant 0 : i32
    %c0_i32_0 = arith.constant 0 : i32
    %c0_i32_1 = arith.constant 0 : i32
    return %arg1, %c0_i32, %c0_i32_0 : i32, i32, i32
  }
  func.func @transform_5(%arg0: i32, %arg1: i32) -> (i32, i32, i32) {
    %c0_i32 = arith.constant 0 : i32
    %c0_i32_0 = arith.constant 0 : i32
    %c0_i32_1 = arith.constant 0 : i32
    return %arg1, %c0_i32, %c0_i32_0 : i32, i32, i32
  }
  func.func @transform_6(%arg0: i32, %arg1: i32) -> (i32, i32, i32) {
    %c0_i32 = arith.constant 0 : i32
    %c0_i32_0 = arith.constant 0 : i32
    %c0_i32_1 = arith.constant 0 : i32
    return %arg1, %c0_i32, %c0_i32_0 : i32, i32, i32
  }
  func.func @transform_7(%arg0: i32, %arg1: i32) -> (i32, i32, i32) {
    %c0_i32 = arith.constant 0 : i32
    %c0_i32_0 = arith.constant 0 : i32
    %c0_i32_1 = arith.constant 0 : i32
    return %arg1, %c0_i32, %c0_i32_0 : i32, i32, i32
  }
  func.func @transform_8(%arg0: i32, %arg1: i32) -> (i32, i32, i32) {
    %c0_i32 = arith.constant 0 : i32
    %c0_i32_0 = arith.constant 0 : i32
    %c0_i32_1 = arith.constant 0 : i32
    return %arg1, %c0_i32, %c0_i32_0 : i32, i32, i32
  }
  func.func @transform_9(%arg0: i32, %arg1: i32) -> (i32, i32, i32) {
    %c0_i32 = arith.constant 0 : i32
    %c0_i32_0 = arith.constant 0 : i32
    %c0_i32_1 = arith.constant 0 : i32
    return %arg1, %c0_i32, %c0_i32_0 : i32, i32, i32
  }
  func.func @transform_10(%arg0: i32, %arg1: i32) -> (i32, i32, i32) {
    %c0_i32 = arith.constant 0 : i32
    %c0_i32_0 = arith.constant 0 : i32
    %c0_i32_1 = arith.constant 0 : i32
    return %arg1, %c0_i32, %c0_i32_0 : i32, i32, i32
  }
  func.func @transform_11(%arg0: i32, %arg1: i32) -> (i32, i32, i32) {
    %c0_i32 = arith.constant 0 : i32
    %c0_i32_0 = arith.constant 0 : i32
    %c0_i32_1 = arith.constant 0 : i32
    return %arg1, %c0_i32, %c0_i32_0 : i32, i32, i32
  }
  func.func @transform_12(%arg0: i32, %arg1: i32) -> (i32, i32, i32) {
    %c0_i32 = arith.constant 0 : i32
    %c0_i32_0 = arith.constant 0 : i32
    %c0_i32_1 = arith.constant 0 : i32
    return %arg1, %c0_i32, %c0_i32_0 : i32, i32, i32
  }
  func.func @transform_13(%arg0: i32, %arg1: i32) -> (i32, i32, i32) {
    %c0_i32 = arith.constant 0 : i32
    %c0_i32_0 = arith.constant 0 : i32
    %c0_i32_1 = arith.constant 0 : i32
    return %arg1, %c0_i32, %c0_i32_0 : i32, i32, i32
  }
  func.func @transform_14(%arg0: i32, %arg1: i32) -> (i32, i32, i32) {
    %c0_i32 = arith.constant 0 : i32
    %c0_i32_0 = arith.constant 0 : i32
    %c0_i32_1 = arith.constant 0 : i32
    return %arg1, %c0_i32, %c0_i32_0 : i32, i32, i32
  }
  func.func @transform_15(%arg0: i32, %arg1: i32) -> (i32, i32, i32) {
    %c0_i32 = arith.constant 0 : i32
    %c0_i32_0 = arith.constant 0 : i32
    %c0_i32_1 = arith.constant 0 : i32
    return %arg1, %c0_i32, %c0_i32_0 : i32, i32, i32
  }
  func.func @transform_16(%arg0: i32, %arg1: i32) -> (i32, i32, i32) {
    %c0_i32 = arith.constant 0 : i32
    %c0_i32_0 = arith.constant 0 : i32
    %c0_i32_1 = arith.constant 0 : i32
    return %arg0, %c0_i32, %c0_i32_0 : i32, i32, i32
  }
}

</mosaic_0001>

<bundles_post_ra>
// kernel: tweet_model_forward.1
= control target key start
LH: loop header
LB: loop body
LE: loop exit
PB: predicated region body
PF: predicated region fallthrough
CT: control target
= control target key end

     0   :  { %s2351_s21 = smov 0   ;;  %s2353_s22 = smov 0   ;;  %s2649_s0 = inlined_call_operand.vmem [shape: f32[2,1,8], index: 0, kind: input, shape index: {}]   ;;  %s2650_s1 = inlined_call_operand.vmem [shape: bf16[2,8,64], index: 1, kind: input, shape index: {}]   ;;  %s2651_s2 = inlined_call_operand.vmem [shape: f32[1,64], index: 2, kind: input, shape index: {}]   ;;  %s2652_s3 = inlined_call_operand.vmem [shape: f32[1,64], index: 3, kind: input, shape index: {}]   ;;  %s2653_s4 = inlined_call_operand.vmem [shape: bf16[2,64,192], index: 4, kind: input, shape index: {}]   ;;  %s2654_s5 = inlined_call_operand.vmem [shape: f32[2,1,192], index: 5, kind: input, shape index: {}]   ;;  %s2655_s6 = inlined_call_operand.vmem [shape: bf16[2,64,64], index: 6, kind: input, shape index: {}]   ;;  %s2656_s7 = inlined_call_operand.vmem [shape: f32[2,1,64], index: 7, kind: input, shape index: {}]   ;;  %s2657_s8 = inlined_call_operand.vmem [shape: bf16[2,64,128], index: 8, kind: input, shape index: {}]   ;;  %s2658_s9 = inlined_call_operand.vmem [shape: f32[2,1,128], index: 9, kind: input, shape index: {}]   ;;  %s2659_s10 = inlined_call_operand.vmem [shape: bf16[2,128,64], index: 10, kind: input, shape index: {}]   ;;  %s2660_s11 = inlined_call_operand.vmem [shape: f32[2,1,64], index: 11, kind: input, shape index: {}]   ;;  %s2661_s12 = inlined_call_operand.vmem [shape: f32[2,1,64], index: 12, kind: input, shape index: {}]   ;;  %s2662_s13 = inlined_call_operand.vmem [shape: f32[2,1,64], index: 13, kind: input, shape index: {}]   ;;  %s2663_s14 = inlined_call_operand.vmem [shape: f32[2,1,64], index: 14, kind: input, shape index: {}]   ;;  %s2664_s15 = inlined_call_operand.vmem [shape: f32[2,1,64], index: 15, kind: input, shape index: {}]   ;;  %s2665_s16 = inlined_call_operand.vmem [shape: f32[2,8,128], index: 16, kind: output, shape index: {}]  }
   0x1   :  { %2671 = sst [smem:[#allocation10_spill]] %s2649_s0  ;;  %s2355_s23 = smov 0  }
   0x2   :  { %2672 = sst [smem:[#allocation11_spill]] %s2650_s1  ;;  %s2357_s24 = smov 0  }
   0x3   :  { %2673 = sst [smem:[#allocation12_spill]] %s2651_s2  ;;  %s2359_s25 = smov 0  }
   0x4   :  { %2674 = sst [smem:[#allocation13_spill]] %s2652_s3 }
   0x5   :  { %2675 = sst [smem:[#allocation14_spill]] %s2653_s4 }
   0x6   :  { %2676 = sst [smem:[#allocation15_spill]] %s2654_s5 }
   0x7   :  { %2677 = sst [smem:[#allocation16_spill]] %s2655_s6 }
   0x8   :  { %2678 = sst [smem:[#allocation17_spill]] %s2657_s8 }
   0x9   :  { %2679 = sst [smem:[#allocation18_spill]] %s2659_s10 }
   0xa   :  { %2680 = sst [smem:[#allocation19_spill]] %s2665_s16 }
   0xb LB: > { %2681 = sst [smem:[#allocation3_spill]] %s2238_s21  ;;  %s35_s26 = sadd.s32 1, %s2246_s23  ;;  %s2254_s25 = sphi %s2359_s25, %s26_s25   ;;  %s2250_s24 = sphi %s2357_s24, %s2710_s24   ;;  %s2246_s23 = sphi %s2355_s23, %s2709_s23   ;;  %s2242_s22 = sphi %s2353_s22, %s2708_s22   ;;  %s2238_s21 = sphi %s2351_s21, %s2707_s21  }
   0xc   : > { %2682 = sst [smem:[#allocation4_spill]] %s2246_s23  ;;  %s38_s27 = sadd.s32 1, %s2250_s24 }
   0xd   : > { %2683 = sst [smem:[#allocation5_spill]] %s2250_s24  ;;  %p36_p0 = scmp.ge.s32.totalorder %s35_s26, 2 }
   0xe   : > { %2684 = sst [smem:[#allocation6_spill]] %s2254_s25  ;;  %p1922_p1 = scmp.ge.s32.totalorder %s2254_s25, 1 }
   0xf   : > { %p586_p2 = scmp.lt.s32.totalorder %s2254_s25, 5  ;;  %s2712_s26 = smov (%p36_p0, %s35_s26), 0 }
  0x10   : > { %2685 = sst [smem:[#allocation7_spill]] %s2712_s26  ;;  %s2714_s27 = smov (!%p36_p0, %s38_s27), %s2250_s24 }
  0x11   : > { %p587_p3 = pnand %p1922_p1, %p586_p2  ;;  %p40_p4 = scmp.ge.s32.totalorder %s2714_s27, 2 }
  0x13   : > { %s2716_s27 = smov (%p40_p4, %s2714_s27), 0  ;;  %590 = sbr.rel (%p587_p3) target bundleno = 2933 (0xb75), region = 84 }
  0x14   : > { %2686 = sst [smem:[#allocation8_spill]] %s2716_s27 }
  0x18   : > { %p682_p5 = scmp.lt.s32.totalorder %s2242_s22, 1  ;;  %p689_p6 = scmp.lt.s32.totalorder %s2238_s21, 1 }
  0x19   : > { %s2688_s1 = sld [smem:[#allocation11_spill]] }
  0x1a   : > { %s2718_s22 = smov (!%p682_p5, %s2242_s22), 1  ;;  %s2689_s4 = sld [smem:[#allocation14_spill]] }
  0x1b   : > { %s2387_s28 = scalar_select %p689_p6, %s2238_s21, 1 }
  0x1c   : > { %s1923_s18 = sshll.u32 %s2718_s22, 2  ;;  %s2691_s5 = sld [smem:[#allocation15_spill]] }
  0x1d   : > { %s1983_s26 = sshll.u32 %s2387_s28, 6  ;;  %s1926_s23 = sshll.u32 %s2387_s28, 1 }
  0x1e   : > { %s1984_s0 = sshll.u32 %s2387_s28, 5  ;;  %s2692_s6 = sld [smem:[#allocation16_spill]] }
  0x1f   : > { %s688_s27 = scalar_lea.vmem %s2688_s1, %s1923_s18  ;;  %s2693_s8 = sld [smem:[#allocation17_spill]] }
  0x20   : > { %s2401_s30 = scalar_lea.vmem %s2689_s4, %s1983_s26  ;;  %s2694_s10 = sld [smem:[#allocation18_spill]] }
  0x21   : > { %2690 = sst [smem:[#allocation9_spill]] %s2401_s30  ;;  %s724_s1 = scalar_lea.vmem %s2661_s12, %s2387_s28 }
  0x22   : > { %s2407_s2 = scalar_lea.vmem %s2691_s5, %s1926_s23  ;;  %s727_s24 = scalar_lea.vmem %s2662_s13, %s2387_s28 }
  0x23   : > { %s730_s30 = scalar_lea.vmem %s2663_s14, %s2387_s28  ;;  %s1933_s25 = sshll.u32 %s2718_s22, 3 }
  0x24   : > { %s2413_s19 = scalar_lea.vmem %s2692_s6, %s1984_s0  ;;  %s2695_s17 = sld [smem:[#allocation19_spill]] }
  0x25   : > { %s2422_s29 = scalar_lea.vmem %s2693_s8, %s1984_s0  ;;  %s2696_s18 = sld [smem:[#allocation3_spill]] }
  0x26   : > { %s2431_s5 = scalar_lea.vmem %s2694_s10, %s1983_s26  ;;  %s733_s26 = scalar_lea.vmem %s2664_s15, %s2387_s28 }
  0x2a   : > { %s2457_s6 = scalar_lea.vmem %s2695_s17, %s1933_s25 }
  0x2b   : > { %p1934_p7 = scmp.ne.s32.totalorder %s2696_s18, 0 }
  0x2c   : > { %s2698_s16 = sld [smem:[#allocation13_spill]] (!%p1934_p7) }
  0x2d   : > { %742 = sbr.rel (%p1934_p7) target bundleno = 362 (0x16a), region = 88 }
  0x32   : > { %v743_v0 = vld [vmem:[%s688_s27] sm:$0xf]  ;;  %vm747_vm0 = vcmask 523264   ;;  %s2697_s27 = sld [smem:[#allocation12_spill]] }
  0x33   : > { %v744_v1 = vunpack.c.l.bf16 %v743_v0  ;;  %v1936_v14 = vld [vmem:[%s2698_s16] ss:$0 sm:$0xff] }
  0x35   : > { %v748_v2 = vsel %vm747_vm0, %v744_v1, 0.0 }
  0x36   : > { %749 = vadd.xlane.f32.xlu0 %v748_v2 }
  0x38   : > { %v1935_v12 = vld [vmem:[%s2697_s27] ss:$0 sm:$0xff] }
  0xbf   : > { %v750_v3 = vpop.xlane.xlu0 %749 }
  0xc0   : > { %v752_v4 = vmul.f32 0.015625, %v750_v3 }
  0xc2   : > { %v753_v5 = vsub.f32 %v744_v1, %v752_v4 }
  0xc4   : > { %v754_v6 = vmul.f32 %v753_v5, %v753_v5 }
  0xc6   : > { %v755_v7 = vsel %vm747_vm0, %v754_v6, 0.0 }
  0xc7   : > { %756 = vadd.xlane.f32.xlu0 %v755_v7 }
 0x150   : > { %v757_v8 = vpop.xlane.xlu0 %756 }
 0x151   : > { %v758_v9 = vmul.f32 0.015625, %v757_v8 }
 0x153   : > { %v759_v10 = vadd.f32 1e-05, %v758_v9 }
 0x155   : > { %2164 = vrsqrt.f32 %v759_v10 }
 0x162   : > { %v2165_v11 = vpop.eup %2164 }
 0x163   : > { %v761_v13 = vmul.f32 %v2165_v11, %v753_v5 }
 0x165   : > { %v768_v15 = vmul.f32 %v1935_v12, %v761_v13 }
 0x167   : > { %v775_v16 = vadd.f32 %v1936_v14, %v768_v15 }
 0x169   : > { %776 = vst.msk [vmem:[#allocation2] sm:$0xff] %vm747_vm0, %v775_v16 }
 0x16a PF: > { %s2699_s0 = sld [smem:[#allocation9_spill]]  ;;  %v2256_v19 = vmov 0   ;;  %vm840_vm1 = vcmask 523264   ;;  %v790_v28 = vlaneseq  ;;  %v788_v31 = vld [vmem:[%s2407_s2] sm:$0x3]  ;;  %v2257_v32 = vmov 0.0   ;;  %s2702_s20 = scalar_lea.vmem %s2656_s7, %s2387_s28 }
 0x16b   : > { %876 = vmatprep.mubr.bf16.mxu1 %v2256_v19  ;;  %2034 = vmatprep.subr.bf16.mxu0 %v2257_v32  ;;  %vm2258_vm2 = vmmov 0   ;;  %s2259_s4 = smov 80   ;;  %s2260_s2 = smov 112   ;;  %vm922_vm3 = vcmask 130048   ;;  %vm1168_vm4 = vcmask 1043456   ;;  %vm1116_vm5 = vcmask 64512  }
 0x16c   : > { %v791_v29 = vshrl.u32 %v790_v28, 7  ;;  %2036 = vmatprep.mubr.msk.bf16.mxu0 %vm2258_vm2, %v2257_v32  ;;  %s2261_s23 = smov 96   ;;  %s2262_s25 = smov 64   ;;  %vm1363_vm6 = vcmask 261120   ;;  %vm1365_vm7 = vcmask 392192  }
 0x16d   : > { %s2700_s18 = sld [smem:[#allocation10_spill]]  ;;  %s2264_s10 = smov 32  }
 0x16e   : > { %v792_v30 = vsub.s32 0, %v791_v29  ;;  %v796_v48 = vsub.s32 1, %v791_v29  ;;  %s2265_s27 = smov 48  }
 0x170   : > { %v2166_v17 = vld [vmem:[%s2699_s0 + $0x34] ss:$8 sps:$4 sm:$0xff]   ;;  %v2168_v18 = vld [vmem:[%s2699_s0 + $0x30] ss:$8 sps:$4 sm:$0xff]   ;;  %v2169_v20 = vld [vmem:[%s2699_s0 + $0x24] ss:$8 sps:$4 sm:$0xff]   ;;  %v793_v33 = vrot.slane %v788_v31, %v792_v30  ;;  %v797_v50 = vrot.slane %v788_v31, %v796_v48 }
 0x171   : > { %852 = vmatprep.subr.bf16.mxu1 %v2166_v17  ;;  %v2171_v21 = vld [vmem:[%s2699_s0 + $0x20] ss:$8 sps:$4 sm:$0xff]   ;;  %v2172_v22 = vld [vmem:[%s2699_s0 + $0x14] ss:$8 sps:$4 sm:$0xff]   ;;  %v2174_v23 = vld [vmem:[%s2699_s0 + $0x10] ss:$8 sps:$4 sm:$0xff]  }
 0x172   : > { %853 = vmatpush1.bf16.msra.mxu1 %v2168_v18  ;;  %v2175_v24 = vld [vmem:[%s2699_s0 + $0x4] ss:$8 sps:$4 sm:$0xff]   ;;  %v2177_v25 = vld [vmem:[%s2699_s0] ss:$8 sps:$4 sm:$0xff]  }
 0x173   : > { %854 = vmatprep.subr.bf16.mxu1 %v2169_v20  ;;  %v2477_v26 = vld [vmem:[#allocation2] sm:$0xff]  ;;  %s2701_s8 = scalar_lea.vmem %s2700_s18, %s2718_s22  ;;  %s2263_s22 = smov 16  }
 0x174   : > { %v779_v27 = vpack.c.bf16 %v2477_v26, %v2477_v26  ;;  %v1946_v59 = vld [vmem:[%s2701_s8] ss:$0 sm:$0xff] }
 0x176   : > { %855 = vmatpush1.bf16.msra.mxu1 %v2171_v21 }
 0x177   : > { %856 = vmatprep.subr.bf16.mxu1 %v2172_v22 }
 0x17a   : > { %857 = vmatpush1.bf16.msra.mxu1 %v2174_v23 }
 0x17b   : > { %858 = vmatprep.subr.bf16.mxu1 %v2175_v24 }
 0x17e   : > { %859 = vmatpush1.bf16.msra.mxu1 %v2177_v25 }
 0x17f   : > { %2022 = vmatprep.subr.bf16.mxu1 %v2257_v32 }
 0x181   : > { %1945 = vmatmul.mubr.msk.bf16.vlgmr.msra.gmra.mxu1 %vm840_vm1, %v779_v27 }
 0x182   : > { %2024 = vmatprep.mubr.msk.bf16.mxu1 %vm2258_vm2, %v2257_v32 }
 0x241   : > { %v878_v34 = vpop.f32.mrf.mxu1 }
 0x242   : > { %v879_v35 = vadd.f32 %v878_v34, %v793_v33 }
 0x243   : > { %v880_v36 = vpop.f32.mrf.mxu1 }
 0x244   : > { %892 = vrot.lane.b32.xlu1 %v879_v35, %s2259_s4  ;;  %886 = vrot.lane.b32.xlu0 %v879_v35, %s2260_s2  ;;  %v895_v38 = vpack.c.bf16 %v879_v35, %v879_v35  ;;  %v2499_v53 = vadd.f32 %v880_v36, %v797_v50 }
 0x245   : > { %v882_v37 = vpop.f32.mrf.mxu1 }
 0x246   : > { %v909_v57 = vpack.c.bf16 %v2499_v53, %v2499_v53 }
 0x247   : > { %v883_v39 = vpop.f32.mrf.mxu1 }
 0x248   : > { %889 = vrot.lane.b32.xlu0 %v879_v35, %s2261_s23  ;;  %920 = vrot.lane.b32.xlu1 %v895_v38, %s2262_s25  ;;  %v1170_v58 = vsel %vm1168_vm4, %v909_v57, 0 }
 0x2b6   : > { %v893_v40 = vpop.permute.xlu1 %892  ;;  %v887_v41 = vpop.permute.xlu0 %886 }
 0x2b7   : > { %v896_v42 = vpack.c.bf16 %v887_v41, %v887_v41  ;;  %v898_v45 = vpack.c.bf16 %v893_v40, %v893_v40 }
 0x2b9   : > { %970 = vrot.lane.b32.xlu0 %v896_v42, %s2262_s25 }
 0x2ba   : > { %v890_v43 = vpop.permute.xlu0 %889  ;;  %v921_v44 = vpop.permute.xlu1 %920 }
 0x2bb   : > { %v897_v46 = vpack.c.bf16 %v890_v43, %v890_v43  ;;  %v927_v47 = vsel %vm922_vm3, %v921_v44, 0 }
 0x2bc   : > { %2023 = vmatpush3.bf16.xpose.msra.mxu1 %v927_v47 }
 0x2bd   : > { %1068 = vrot.lane.b32.xlu0 %v898_v45, %s2262_s25  ;;  %1019 = vrot.lane.b32.xlu1 %v897_v46, %s2262_s25  ;;  %s2704_s25 = scalar_lea.vmem %s2660_s11, %s2387_s28 }
 0x2be   : > { %2028 = vmatprep.subr.bf16.mxu1 %v2257_v32 }
 0x2c3   : > { %2025 = vmatmul.mubr.msk.bf16.vlgmr.msra.gmra.mxu1 %vm922_vm3, %v895_v38 }
 0x2c4   : > { %2030 = vmatprep.mubr.msk.bf16.mxu1 %vm2258_vm2, %v2257_v32 }
 0x32b   : > { %v971_v49 = vpop.permute.xlu0 %970 }
 0x32c   : > { %v976_v51 = vsel %vm922_vm3, %v971_v49, 0 }
 0x32d   : > { %2029 = vmatpush3.bf16.xpose.msra.mxu1 %v976_v51 }
 0x32e   : > { %2040 = vmatprep.subr.bf16.mxu1 %v2257_v32 }
 0x32f   : > { %v1020_v52 = vpop.permute.xlu1 %1019  ;;  %v1069_v55 = vpop.permute.xlu0 %1068 }
 0x330   : > { %v1025_v54 = vsel %vm922_vm3, %v1020_v52, 0  ;;  %v1074_v56 = vsel %vm922_vm3, %v1069_v55, 0 }
 0x331   : > { %2035 = vmatpush3.bf16.xpose.msra.mxu0 %v1025_v54 }
 0x332   : > { %2046 = vmatprep.subr.bf16.mxu0 %v2257_v32 }
 0x334   : > { %2031 = vmatmul.mubr.msk.bf16.vlgmr.msra.gmra.mxu1 %vm922_vm3, %v896_v42 }
 0x335   : > { %2041 = vmatpush3.bf16.xpose.msra.mxu1 %v1074_v56  ;;  %2042 = vmatprep.mubr.msk.bf16.mxu1 %vm2258_vm2, %v2257_v32 }
 0x336   : > { %2052 = vmatprep.subr.bf16.mxu1 %v2257_v32 }
 0x338   : > { %2037 = vmatmul.mubr.msk.bf16.vlgmr.msra.gmra.mxu0 %vm922_vm3, %v897_v46 }
 0x339   : > { %2047 = vmatpush3.bf16.msra.mxu0 %v1170_v58  ;;  %2048 = vmatprep.mubr.msk.bf16.mxu0 %vm2258_vm2, %v2257_v32 }
 0x33a   : > { %2058 = vmatprep.subr.bf16.mxu0 %v2257_v32 }
 0x33c   : > { %2043 = vmatmul.mubr.msk.bf16.vlgmr.msra.gmra.mxu1 %vm922_vm3, %v898_v45 }
 0x33d   : > { %2054 = vmatprep.mubr.msk.bf16.mxu1 %vm2258_vm2, %v2257_v32 }
 0x383   : > { %v963_v60 = vpop.f32.mrf.mxu1 }
 0x384   : > { %v964_v61 = vadd.f32 %v1946_v59, %v963_v60 }
 0x385   : > { %v2026_v62 = vpop.f32.mrf.mxu1 }
 0x386   : > { %v1117_v63 = vsel %vm1116_vm5, %v964_v61, -inf }
 0x387   : > { %1118 = vmax.xlane.f32.xlu1 %v1117_v63  ;;  %v966_v0 = vpop.f32.mrf.mxu1 }
 0x389   : > { %v2027_v1 = vpop.f32.mrf.mxu1 }
 0x3f4   : > { %v1012_v2 = vpop.f32.mrf.mxu1 }
 0x3f5   : > { %v1013_v3 = vadd.f32 %v1946_v59, %v1012_v2 }
 0x3f6   : > { %v2032_v4 = vpop.f32.mrf.mxu1 }
 0x3f7   : > { %v1120_v5 = vsel %vm1116_vm5, %v1013_v3, -inf }
 0x3f8   : > { %1121 = vmax.xlane.f32.xlu0 %v1120_v5  ;;  %v1015_v6 = vpop.f32.mrf.mxu1  ;;  %v1061_v7 = vpop.f32.mrf.mxu0 }
 0x3f9   : > { %v1062_v8 = vadd.f32 %v1946_v59, %v1061_v7  ;;  %v2178_v7 = vld [vmem:[%s2413_s19 + $0x18] sm:$0xff]  }
 0x3fa   : > { %v2033_v9 = vpop.f32.mrf.mxu1  ;;  %v2038_v10 = vpop.f32.mrf.mxu0 }
 0x3fb   : > { %v1123_v11 = vsel %vm1116_vm5, %v1062_v8, -inf  ;;  %v2180_v9 = vld [vmem:[%s2413_s19 + $0x8] sm:$0xff]  }
 0x3fc   : > { %v1110_v12 = vpop.f32.mrf.mxu1  ;;  %1124 = vmax.xlane.f32.xlu0 %v1123_v11  ;;  %v1064_v13 = vpop.f32.mrf.mxu0 }
 0x3fd   : > { %v1111_v14 = vadd.f32 %v1946_v59, %v1110_v12 }
 0x3fe   : > { %v2039_v15 = vpop.f32.mrf.mxu0  ;;  %v2044_v16 = vpop.f32.mrf.mxu1 }
 0x3ff   : > { %v1126_v17 = vsel %vm1116_vm5, %v1111_v14, -inf }
 0x400   : > { %1127 = vmax.xlane.f32.xlu1 %v1126_v17  ;;  %v1113_v18 = vpop.f32.mrf.mxu1 }
 0x401   : > { %v2181_v18 = vld [vmem:[%s2413_s19] sm:$0xff]  }
 0x402   : > { %v2045_v19 = vpop.f32.mrf.mxu1 }
 0x410   : > { %v1119_v20 = vpop.xlane.xlu1 %1118 }
 0x411   : > { %v1129_v21 = vsub.f32 %v964_v61, %v1119_v20 }
 0x413   : > { %v1133_v22 = vmul.f32 1.442695, %v1129_v21 }
 0x415   : > { %2194 = vpow2.f32 %v1133_v22 }
 0x422   : > { %v2195_v23 = vpop.eup %2194 }
 0x423   : > { %v1141_v24 = vsel %vm1116_vm5, %v2195_v23, 0.0 }
 0x424   : > { %1142 = vadd.xlane.f32.xlu0 %v1141_v24 }
 0x481   : > { %v1122_v25 = vpop.xlane.xlu0 %1121 }
 0x482   : > { %v1130_v27 = vsub.f32 %v1013_v3, %v1122_v25 }
 0x484   : > { %v1135_v28 = vmul.f32 1.442695, %v1130_v27 }
 0x485   : > { %v1125_v29 = vpop.xlane.xlu0 %1124 }
 0x486   : > { %2196 = vpow2.f32 %v1135_v28  ;;  %v1131_v30 = vsub.f32 %v1062_v8, %v1125_v29  ;;  %v2179_v8 = vld [vmem:[%s2413_s19 + $0x10] sm:$0xff]  }
 0x488   : > { %v1137_v31 = vmul.f32 1.442695, %v1131_v30 }
 0x489   : > { %v1128_v38 = vpop.xlane.xlu1 %1127 }
 0x48a   : > { %2198 = vpow2.f32 %v1137_v31  ;;  %v1132_v39 = vsub.f32 %v1111_v14, %v1128_v38  ;;  %v1955_v31 = vld [vmem:[%s2702_s20] ss:$0 sm:$0xff] }
 0x48c   : > { %v1139_v40 = vmul.f32 1.442695, %v1132_v39 }
 0x493   : > { %v2197_v33 = vpop.eup %2196 }
 0x494   : > { %v1144_v34 = vsel %vm1116_vm5, %v2197_v33, 0.0 }
 0x495   : > { %1145 = vadd.xlane.f32.xlu1 %v1144_v34 }
 0x497   : > { %v2199_v35 = vpop.eup %2198 }
 0x498   : > { %v1147_v36 = vsel %vm1116_vm5, %v2199_v35, 0.0 }
 0x499   : > { %1148 = vadd.xlane.f32.xlu0 %v1147_v36 }
 0x4a6   : > { %903 = vrot.lane.b32.xlu1 %v2499_v53, %s2261_s23 }
 0x4ad   : > { %v1143_v37 = vpop.xlane.xlu0 %1142 }
 0x4ae   : > { %2200 = vrcp.f32 %v1143_v37 }
 0x4af   : > { %900 = vrot.lane.b32.xlu0 %v2499_v53, %s2260_s2  ;;  %2202 = vpow2.f32 %v1139_v40 }
 0x4bb   : > { %v2201_v41 = vpop.eup %2200 }
 0x4bc   : > { %v1157_v42 = vmul.f32 %v2201_v41, %v2195_v23  ;;  %v2203_v44 = vpop.eup %2202 }
 0x4bd   : > { %v1150_v45 = vsel %vm1116_vm5, %v2203_v44, 0.0 }
 0x4be   : > { %v1161_v43 = vpack.c.bf16 %v1157_v42, %v1157_v42 }
 0x4c0   : > { %2049 = vmatmul.mubr.msk.bf16.vlgmr.msra.gmra.mxu0 %vm1116_vm5, %v1161_v43 }
 0x4c1   : > { %2060 = vmatprep.mubr.msk.bf16.mxu0 %vm2258_vm2, %v2257_v32 }
 0x4ca   : > { %1151 = vadd.xlane.f32.xlu1 %v1150_v45  ;;  %v2182_v45 = vld [vmem:[%s2422_s29 + $0x18] sm:$0xff]  }
 0x4db   : > { %906 = vrot.lane.b32.xlu1 %v2499_v53, %s2259_s4 }
 0x51e   : > { %v1146_v46 = vpop.xlane.xlu1 %1145 }
 0x51f   : > { %2204 = vrcp.f32 %v1146_v46  ;;  %v2184_v46 = vld [vmem:[%s2422_s29 + $0x8] sm:$0xff]  }
 0x522   : > { %v1149_v47 = vpop.xlane.xlu0 %1148  ;;  %v904_v48 = vpop.permute.xlu1 %903 }
 0x523   : > { %2206 = vrcp.f32 %v1149_v47  ;;  %v911_v49 = vpack.c.bf16 %v904_v48, %v904_v48  ;;  %v2185_v47 = vld [vmem:[%s2422_s29] sm:$0xff]  }
 0x525   : > { %v1262_v50 = vsel %vm1168_vm4, %v911_v49, 0 }
 0x526   : > { %v901_v51 = vpop.permute.xlu0 %900  ;;  %2059 = vmatpush3.bf16.msra.mxu0 %v1262_v50 }
 0x527   : > { %v910_v52 = vpack.c.bf16 %v901_v51, %v901_v51  ;;  %2070 = vmatprep.subr.bf16.mxu0 %v2257_v32 }
 0x529   : > { %v1216_v54 = vsel %vm1168_vm4, %v910_v52, 0  ;;  %v1961_v52 = vld [vmem:[%s724_s1] ss:$0 sm:$0xff] }
 0x52a   : > { %2053 = vmatpush3.bf16.msra.mxu1 %v1216_v54 }
 0x52b   : > { %2064 = vmatprep.subr.bf16.mxu1 %v2257_v32 }
 0x52c   : > { %v2205_v55 = vpop.eup %2204 }
 0x52d   : > { %v1158_v53 = vmul.f32 %v2205_v55, %v2197_v33  ;;  %v1962_v55 = vld [vmem:[%s727_s24] ss:$0 sm:$0xff]  ;;  %s2703_s24 = scalar_lea.vmem %s2658_s9, %s2387_s28 }
 0x52f   : > { %v1162_v56 = vpack.c.bf16 %v1158_v53, %v1158_v53 }
 0x530   : > { %v2207_v57 = vpop.eup %2206 }
 0x531   : > { %2055 = vmatmul.mubr.msk.bf16.vlgmr.msra.gmra.mxu1 %vm1116_vm5, %v1162_v56  ;;  %v1159_v58 = vmul.f32 %v2207_v57, %v2199_v35 }
 0x532   : > { %2066 = vmatprep.mubr.msk.bf16.mxu1 %vm2258_vm2, %v2257_v32 }
 0x533   : > { %v1163_v59 = vpack.c.bf16 %v1159_v58, %v1159_v58  ;;  %v2186_v58 = vld [vmem:[%s2431_s5 + $0x38] sm:$0xff]  }
 0x535   : > { %2061 = vmatmul.mubr.msk.bf16.vlgmr.msra.gmra.mxu0 %vm1116_vm5, %v1163_v59  ;;  %v2187_v59 = vld [vmem:[%s2431_s5 + $0x30] sm:$0xff]  }
 0x536   : > { %2078 = vmatprep.mubr.msk.bf16.mxu0 %vm2258_vm2, %v2257_v32  ;;  %2071 = vmatpush3.bf16.msra.mxu0 %v2178_v7 }
 0x537   : > { %2072 = vmatprep.subr.bf16.mxu0 %v2257_v32 }
 0x53a   : > { %2073 = vmatpush3.bf16.msra.mxu0 %v2179_v8 }
 0x53b   : > { %2074 = vmatprep.subr.bf16.mxu0 %v2257_v32 }
 0x53e   : > { %2075 = vmatpush3.bf16.msra.mxu0 %v2180_v9 }
 0x53f   : > { %2076 = vmatprep.subr.bf16.mxu0 %v2257_v32 }
 0x542   : > { %2077 = vmatpush3.bf16.msra.mxu0 %v2181_v18 }
 0x543   : > { %2094 = vmatprep.subr.bf16.mxu0 %v2257_v32 }
 0x553   : > { %v1152_v60 = vpop.xlane.xlu1 %1151 }
 0x554   : > { %2208 = vrcp.f32 %v1152_v60  ;;  %v2188_v60 = vld [vmem:[%s2431_s5 + $0x28] sm:$0xff]  }
 0x557   : > { %v907_v61 = vpop.permute.xlu1 %906 }
 0x558   : > { %v912_v62 = vpack.c.bf16 %v907_v61, %v907_v61  ;;  %v2189_v61 = vld [vmem:[%s2431_s5 + $0x20] sm:$0xff]  }
 0x55a   : > { %v1308_v63 = vsel %vm1168_vm4, %v912_v62, 0  ;;  %v2190_v62 = vld [vmem:[%s2431_s5 + $0x18] sm:$0xff]  }
 0x55b   : > { %2065 = vmatpush3.bf16.msra.mxu1 %v1308_v63  ;;  %v2191_v63 = vld [vmem:[%s2431_s5 + $0x10] sm:$0xff]  }
 0x55c   : > { %2082 = vmatprep.subr.bf16.mxu1 %v2257_v32 }
 0x561   : > { %v2209_v0 = vpop.eup %2208 }
 0x562   : > { %v1160_v1 = vmul.f32 %v2209_v0, %v2203_v44  ;;  %v2192_v0 = vld [vmem:[%s2431_s5 + $0x8] sm:$0xff]  }
 0x564   : > { %v1164_v2 = vpack.c.bf16 %v1160_v1, %v1160_v1  ;;  %v2193_v1 = vld [vmem:[%s2431_s5] sm:$0xff]  }
 0x566   : > { %2067 = vmatmul.mubr.msk.bf16.vlgmr.msra.gmra.mxu1 %vm1116_vm5, %v1164_v2  ;;  %v1963_v2 = vld [vmem:[%s2703_s24] ss:$0 sm:$0xff] }
 0x567   : > { %2090 = vmatprep.mubr.msk.bf16.mxu1 %vm2258_vm2, %v2257_v32  ;;  %2083 = vmatpush3.bf16.msra.mxu1 %v2182_v45 }
 0x568   : > { %2084 = vmatprep.subr.bf16.mxu1 %v2257_v32 }
 0x580   : > { %v1206_v3 = vpop.f32.mrf.mxu0 }
 0x582   : > { %v2050_v4 = vpop.f32.mrf.mxu0 }
 0x584   : > { %v1209_v5 = vpop.f32.mrf.mxu0 }
 0x586   : > { %v2051_v6 = vpop.f32.mrf.mxu0 }
 0x5f1   : > { %v1252_v10 = vpop.f32.mrf.mxu1 }
 0x5f2   : > { %1351 = vrot.lane.b32.xlu0 %v1252_v10, %s2263_s22  ;;  %s2705_s22 = sld [smem:[#allocation3_spill]] }
 0x5f3   : > { %v2056_v11 = vpop.f32.mrf.mxu1 }
 0x5f5   : > { %v1255_v12 = vpop.f32.mrf.mxu1  ;;  %v1298_v13 = vpop.f32.mrf.mxu0 }
 0x5f6   : > { %1355 = vrot.lane.b32.xlu1 %v1298_v13, %s2264_s10 }
 0x5f7   : > { %v2057_v14 = vpop.f32.mrf.mxu1  ;;  %v2062_v15 = vpop.f32.mrf.mxu0 }
 0x5f8   : > { %p1980_p8 = scmp.ne.s32.totalorder %s2705_s22, 1 }
 0x5f9   : > { %v1301_v16 = vpop.f32.mrf.mxu0 }
 0x5fb   : > { %v2063_v17 = vpop.f32.mrf.mxu0 }
 0x5fc   : > { %v1969_v17 = vld [vmem:[%s2704_s25] ss:$0 sm:$0xff] }
 0x626   : > { %v1344_v19 = vpop.f32.mrf.mxu1 }
 0x627   : > { %1359 = vrot.lane.b32.xlu0 %v1344_v19, %s2265_s27 }
 0x628   : > { %v2068_v20 = vpop.f32.mrf.mxu1 }
 0x62a   : > { %v1347_v21 = vpop.f32.mrf.mxu1 }
 0x62c   : > { %v2069_v22 = vpop.f32.mrf.mxu1 }
 0x664   : > { %v1352_v23 = vpop.permute.xlu0 %1351 }
 0x665   : > { %v1362_v25 = vsel %vm922_vm3, %v1206_v3, %v1352_v23 }
 0x668   : > { %v1356_v24 = vpop.permute.xlu1 %1355 }
 0x669   : > { %v1364_v27 = vsel %vm1363_vm6, %v1362_v25, %v1356_v24 }
 0x699   : > { %v1360_v28 = vpop.permute.xlu0 %1359 }
 0x69a   : > { %v1366_v29 = vsel %vm1365_vm7, %v1364_v27, %v1360_v28 }
 0x69b   : > { %v1367_v30 = vpack.c.bf16 %v1366_v29, %v1366_v29 }
 0x69d   : > { %2079 = vmatmul.mubr.msk.bf16.vlgmr.msra.gmra.mxu0 %vm840_vm1, %v1367_v30 }
 0x69e   : > { %2110 = vmatprep.mubr.msk.bf16.mxu0 %vm2258_vm2, %v2257_v32  ;;  %2095 = vmatpush3.bf16.msra.mxu0 %v2186_v58 }
 0x69f   : > { %2096 = vmatprep.subr.bf16.mxu0 %v2257_v32 }
 0x6a2   : > { %2097 = vmatpush3.bf16.msra.mxu0 %v2187_v59 }
 0x6a3   : > { %2098 = vmatprep.subr.bf16.mxu0 %v2257_v32 }
 0x6a6   : > { %2099 = vmatpush3.bf16.msra.mxu0 %v2188_v60 }
 0x6a7   : > { %2100 = vmatprep.subr.bf16.mxu0 %v2257_v32 }
 0x6aa   : > { %2101 = vmatpush3.bf16.msra.mxu0 %v2189_v61 }
 0x6ab   : > { %2102 = vmatprep.subr.bf16.mxu0 %v2257_v32 }
 0x6ae   : > { %2103 = vmatpush3.bf16.msra.mxu0 %v2190_v62 }
 0x6af   : > { %2104 = vmatprep.subr.bf16.mxu0 %v2257_v32 }
 0x6b2   : > { %2105 = vmatpush3.bf16.msra.mxu0 %v2191_v63 }
 0x6b3   : > { %2106 = vmatprep.subr.bf16.mxu0 %v2257_v32 }
 0x6b6   : > { %2107 = vmatpush3.bf16.msra.mxu0 %v2192_v0 }
 0x6b7   : > { %2108 = vmatprep.subr.bf16.mxu0 %v2257_v32 }
 0x6ba   : > { %2109 = vmatpush3.bf16.msra.mxu0 %v2193_v1 }
 0x75d   : > { %v1444_v33 = vpop.f32.mrf.mxu0 }
 0x75e   : > { %v1445_v34 = vadd.f32 %v1955_v31, %v1444_v33 }
 0x75f   : > { %v2080_v35 = vpop.f32.mrf.mxu0 }
 0x760   : > { %v1450_v36 = vadd.f32 %v1445_v34, %v2477_v26  ;;  %v2183_v26 = vld [vmem:[%s2422_s29 + $0x10] sm:$0xff]  }
 0x761   : > { %v1447_v37 = vpop.f32.mrf.mxu0  ;;  %2085 = vmatpush3.bf16.msra.mxu1 %v2183_v26 }
 0x762   : > { %v1453_v38 = vsel %vm840_vm1, %v1450_v36, 0.0  ;;  %2086 = vmatprep.subr.bf16.mxu1 %v2257_v32 }
 0x763   : > { %1454 = vadd.xlane.f32.xlu1 %v1453_v38  ;;  %v2081_v39 = vpop.f32.mrf.mxu0  ;;  %v1979_v38 = vld [vmem:[%s733_s26] ss:$0 sm:$0xff] }
 0x765   : > { %2087 = vmatpush3.bf16.msra.mxu1 %v2184_v46 }
 0x766   : > { %2088 = vmatprep.subr.bf16.mxu1 %v2257_v32 }
 0x769   : > { %2089 = vmatpush3.bf16.msra.mxu1 %v2185_v47 }
 0x7ec   : > { %v1455_v40 = vpop.xlane.xlu1 %1454 }
 0x7ed   : > { %v1457_v41 = vmul.f32 0.015625, %v1455_v40 }
 0x7ef   : > { %v1458_v42 = vsub.f32 %v1450_v36, %v1457_v41  ;;  %v1978_v36 = vld [vmem:[%s730_s30] ss:$0 sm:$0xff] }
 0x7f1   : > { %v1459_v43 = vmul.f32 %v1458_v42, %v1458_v42 }
 0x7f3   : > { %v1460_v44 = vsel %vm840_vm1, %v1459_v43, 0.0 }
 0x7f4   : > { %1461 = vadd.xlane.f32.xlu0 %v1460_v44 }
 0x87d   : > { %v1462_v48 = vpop.xlane.xlu0 %1461 }
 0x87e   : > { %v1463_v49 = vmul.f32 0.015625, %v1462_v48 }
 0x880   : > { %v1464_v50 = vadd.f32 1e-05, %v1463_v49 }
 0x882   : > { %2210 = vrsqrt.f32 %v1464_v50 }
 0x88f   : > { %v2211_v51 = vpop.eup %2210 }
 0x890   : > { %v1466_v54 = vmul.f32 %v2211_v51, %v1458_v42 }
 0x892   : > { %v1473_v53 = vmul.f32 %v1961_v52, %v1466_v54 }
 0x894   : > { %v1480_v56 = vadd.f32 %v1962_v55, %v1473_v53 }
 0x896   : > { %v1481_v57 = vpack.c.bf16 %v1480_v56, %v1480_v56 }
 0x898   : > { %2091 = vmatmul.mubr.msk.bf16.vlgmr.msra.gmra.mxu1 %vm840_vm1, %v1481_v57 }
 0x958   : > { %v1558_v3 = vpop.f32.mrf.mxu1 }
 0x959   : > { %v1559_v4 = vadd.f32 %v1963_v2, %v1558_v3 }
 0x95a   : > { %v2092_v5 = vpop.f32.mrf.mxu1 }
 0x95b   : > { %v1565_v6 = vmul.f32 0.044715, %v1559_v4  ;;  %v1564_v32 = vmul.f32 0.5, %v1559_v4 }
 0x95c   : > { %v1561_v7 = vpop.f32.mrf.mxu1 }
 0x95d   : > { %v1566_v8 = vmul.f32 %v1565_v6, %v1559_v4 }
 0x95e   : > { %v2093_v9 = vpop.f32.mrf.mxu1 }
 0x95f   : > { %v1567_v10 = vmul.f32 %v1566_v8, %v1559_v4 }
 0x961   : > { %v1568_v11 = vadd.f32 %v1567_v10, %v1559_v4 }
 0x963   : > { %v1569_v12 = vmul.f32 0.7978846, %v1568_v11 }
 0x965   : > { %2212 = vtanh.f32 %v1569_v12 }
 0x972   : > { %v2213_v13 = vpop.eup %2212 }
 0x973   : > { %v1571_v14 = vadd.f32 1.0, %v2213_v13 }
 0x975   : > { %v1572_v15 = vmul.f32 %v1571_v14, %v1564_v32 }
 0x977   : > { %v1573_v16 = vpack.c.bf16 %v1572_v15, %v1572_v15 }
 0x979   : > { %2111 = vmatmul.mubr.bf16.vlgmr.msra.gmra.mxu0 %v1573_v16 }
 0xa39   : > { %v1679_v18 = vpop.f32.mrf.mxu0 }
 0xa3a   : > { %v1680_v19 = vadd.f32 %v1969_v17, %v1679_v18 }
 0xa3b   : > { %v2112_v20 = vpop.f32.mrf.mxu0 }
 0xa3c   : > { %v1685_v21 = vadd.f32 %v1680_v19, %v1480_v56 }
 0xa3d   : > { %v1682_v22 = vpop.f32.mrf.mxu0 }
 0xa3e   : > { %v1688_v23 = vsel %vm840_vm1, %v1685_v21, 0.0 }
 0xa3f   : > { %1689 = vadd.xlane.f32.xlu0 %v1688_v23  ;;  %v2113_v24 = vpop.f32.mrf.mxu0 }
 0xac8   : > { %v1690_v25 = vpop.xlane.xlu0 %1689 }
 0xac9   : > { %v1691_v27 = vmul.f32 0.015625, %v1690_v25 }
 0xacb   : > { %v1692_v28 = vsub.f32 %v1685_v21, %v1691_v27 }
 0xacd   : > { %v1693_v29 = vmul.f32 %v1692_v28, %v1692_v28 }
 0xacf   : > { %v1694_v30 = vsel %vm840_vm1, %v1693_v29, 0.0 }
 0xad0   : > { %1695 = vadd.xlane.f32.xlu1 %v1694_v30 }
 0xb59   : > { %v1696_v31 = vpop.xlane.xlu1 %1695 }
 0xb5a   : > { %v1697_v33 = vmul.f32 0.015625, %v1696_v31 }
 0xb5c   : > { %v1698_v34 = vadd.f32 1e-05, %v1697_v33 }
 0xb5e   : > { %2214 = vrsqrt.f32 %v1698_v34 }
 0xb6b   : > { %v2215_v35 = vpop.eup %2214 }
 0xb6c   : > { %v1700_v37 = vmul.f32 %v2215_v35, %v1692_v28 }
 0xb6e   : > { %v1707_v39 = vmul.f32 %v1978_v36, %v1700_v37  ;;  %1719 = sbr.rel (%p1980_p8) target bundleno = 2933 (0xb75), region = 92 }
 0xb70   : > { %v1714_v40 = vadd.f32 %v1979_v38, %v1707_v39 }
 0xb72   : > { %1715 = vst.msk [vmem:[#allocation2] sm:$0xff] %vm840_vm1, %v1714_v40 }
 0xb73   : > { %v1720_v41 = vsel %vm840_vm1, %v1714_v40, 0.0 }
 0xb74   : > { %1721 = vst [vmem:[%s2457_s6] sm:$0xff] %v1720_v41 }
 0xb75 PF: > { %s2706_s30 = sld [smem:[#allocation6_spill]] }
 0xb76   : > { %s2707_s21 = sld [smem:[#allocation4_spill]] }
 0xb77   : > { %s2708_s22 = sld [smem:[#allocation5_spill]] }
 0xb78   : > { %s2709_s23 = sld [smem:[#allocation7_spill]] }
 0xb79   : > { %s2710_s24 = sld [smem:[#allocation8_spill]] }
 0xb7b   : > { %s26_s25 = sadd.s32 1, %s2706_s30  }
 0xb7c   : > { %p23_p9 = scmp.ge.s32.totalorder %s26_s25, 6  }
 0xb7e   :  { %25 = sbr.rel (!%p23_p9) target bundleno = 11 (0xb), region = 161 }

</bundles_post_ra>
